<compile_context>
chip_gen: v7x
topology: tpu7x:2x2x1
jax: 0.10.0
libtpu: 0.0.40
codegen_flags: <defaults>
</compile_context>

<pallas_src>
import functools

import jax
import jax.numpy as jnp
from jax.experimental import pallas as pl
from jax.experimental.pallas import tpu as pltpu


# ----------------------------------------------------------------------------
# Fused kernel: (matmul tile) -> per-O-group sum / sum-of-squares -> (B, 1) acc
# ----------------------------------------------------------------------------
def _fused_profile_kernel(x_ref, w_ref, b_ref, g_ref, out_ref, *, inv_o):
    """One weight tile worth of work.

    x_ref  : (B, K)              resident (flattened one-hot sequences)
    w_ref  : (K, TILE_N)         streamed weight tile, TILE_N = ROWS_TILE * O
    b_ref  : (1, TILE_N)         streamed bias tile (f32)
    g_ref  : (TILE_N, ROWS_TILE) resident 0/1 O-group indicator
    out_ref: (B, 1)              resident accumulator across the grid
    """
    logits = jnp.dot(x_ref[...], w_ref[...],
                     preferred_element_type=jnp.float32) + b_ref[...]    # (B, TILE_N) f32

    # sum over all elements of x^2 (per batch)
    sum_sq = jnp.sum(logits * logits, axis=-1, keepdims=True)            # (B, 1)
    # per-O-group sums via a tiny indicator matmul (avoids in-kernel reshapes)
    group_sum = jnp.dot(logits, g_ref[...],
                        preferred_element_type=jnp.float32)              # (B, ROWS_TILE)
    contrib = sum_sq - jnp.sum(group_sum * group_sum, axis=-1,
                               keepdims=True) * inv_o                    # (B, 1)

    @pl.when(pl.program_id(0) == 0)
    def _():
        out_ref[...] = jnp.zeros_like(out_ref)

    out_ref[...] += contrib


def _pick_rows_per_tile(rows, o, max_rows=256):
    """Largest divisor of `rows` <= max_rows keeping the lane width a multiple of 128."""
    for cand in range(min(rows, max_rows), 0, -1):
        if rows % cand == 0 and ((cand * o) % 128 == 0 or cand == rows):
            return cand
    return rows


# ----------------------------------------------------------------------------
# Wrapper: trace-time weight-column permutation + fused pallas_call
# ----------------------------------------------------------------------------
def wrapper_profile_model(input_seqs, weight, bias, *, T, O, S,
                          task_index=None, rows_per_tile=None):
    """Forward pass of WrapperProfileModel.  Returns (B, 1) float32.

    input_seqs: (B, I, 4) one-hot sequences.
    weight    : (I*4, T*O*S) inner-model projection (bf16 or f32), columns in
                the PyTorch (t, o, s) order.
    bias      : (T*O*S,) in the same column order.
    """
    B = input_seqs.shape[0]
    K = input_seqs.shape[1] * input_seqs.shape[2]
    x = input_seqs.reshape(B, K).astype(weight.dtype)   # one-hot is exact in bf16

    # Trace-time column permutation (t, o, s) -> (t, s, o): O becomes the
    # contiguous lane axis, killing the runtime transpose of the logits tensor.
    w = weight.reshape(K, T, O, S).transpose(0, 1, 3, 2)                  # (K, T, S, O)
    b = bias.astype(jnp.float32).reshape(T, O, S).transpose(0, 2, 1)      # (T, S, O)
    if task_index is not None:
        w = w[:, task_index:task_index + 1]
        b = b[task_index:task_index + 1]
    rows = w.shape[0 + 1] * S                                             # T' * S
    w = w.reshape(K, rows * O)
    b = b.reshape(1, rows * O)

    if rows_per_tile is None:
        rows_per_tile = _pick_rows_per_tile(rows, O)
    assert rows % rows_per_tile == 0
    assert (rows_per_tile * O) % 128 == 0 or rows_per_tile == rows
    num_tiles = rows // rows_per_tile
    tile_n = rows_per_tile * O

    # 0/1 indicator mapping each of the TILE_N columns to its O-group; identical
    # for every tile, so it stays resident in VMEM across grid steps.
    col_group = jnp.arange(tile_n, dtype=jnp.int32) // O
    g = (col_group[:, None] ==
         jnp.arange(rows_per_tile, dtype=jnp.int32)[None, :]).astype(jnp.float32)

    kernel = functools.partial(_fused_profile_kernel, inv_o=1.0 / O)
    return pl.pallas_call(
        kernel,
        out_shape=jax.ShapeDtypeStruct((B, 1), jnp.float32),
        grid=(num_tiles,),
        in_specs=[
            pl.BlockSpec((B, K), lambda j: (0, 0)),                   # x (resident)
            pl.BlockSpec((K, tile_n), lambda j: (0, j)),              # weight tile
            pl.BlockSpec((1, tile_n), lambda j: (0, j)),              # bias tile
            pl.BlockSpec((tile_n, rows_per_tile), lambda j: (0, 0)),  # indicator (resident)
        ],
        out_specs=pl.BlockSpec((B, 1), lambda j: (0, 0)),             # accumulator
        compiler_params=pltpu.CompilerParams(
            dimension_semantics=("arbitrary",),          # reduction axis (accumulated)
            vmem_limit_bytes=48 * 1024 * 1024,           # headroom below v7x's 64 MiB
        ),
    )(x, w, b, g)


# ----------------------------------------------------------------------------
# Pure-JAX reference (mirrors the PyTorch forward exactly)
# ----------------------------------------------------------------------------
def reference(input_seqs, weight, bias, *, T, O, S, task_index=None):
    B = input_seqs.shape[0]
    x = input_seqs.reshape(B, -1).astype(jnp.float32)
    logits = (x @ weight.astype(jnp.float32)
              + bias.astype(jnp.float32)).reshape(B, T, O, S)        # B x T x O x S
    norm = logits - jnp.mean(logits, axis=2, keepdims=True)
    log_probs = logits - jax.scipy.special.logsumexp(logits, axis=2, keepdims=True)
    weighted = norm * log_probs
    if task_index is not None:
        weighted = weighted[:, task_index:task_index + 1]
    return jnp.sum(weighted, axis=(1, 2, 3))[:, None]


if __name__ == "__main__":
    # Small shapes consistent with the module: B x I x 4 input, B x T x O x S logits.
    B, I, T, O, S = 2, 16, 2, 128, 2

    key = jax.random.PRNGKey(0)
    k_seq, k_w, k_b = jax.random.split(key, 3)

    # One-hot input sequences (B, I, 4)
    base_idx = jax.random.randint(k_seq, (B, I), 0, 4)
    input_seqs = jax.nn.one_hot(base_idx, 4, dtype=jnp.float32)

    # Synthetic inner-model parameters; bf16 weights halve HBM streaming bytes.
    weight = (jax.random.normal(k_w, (I * 4, T * O * S), jnp.float32)
              * 0.1).astype(jnp.bfloat16)
    bias = jax.random.normal(k_b, (T * O * S,), jnp.float32) * 0.01

    # All tasks, multiple weight tiles (exercises the grid accumulation).
    out_all = wrapper_profile_model(input_seqs, weight, bias, T=T, O=O, S=S,
                                    task_index=None, rows_per_tile=2)
    out_all = jax.block_until_ready(out_all)
    ref_all = reference(input_seqs, weight, bias, T=T, O=O, S=S, task_index=None)
    assert out_all.shape == (B, 1)
    assert jnp.allclose(out_all, ref_all, rtol=1e-3, atol=1e-3), (out_all, ref_all)

    # Single task (task_index=1), single tile.
    out_t1 = wrapper_profile_model(input_seqs, weight, bias, T=T, O=O, S=S,
                                   task_index=1)
    out_t1 = jax.block_until_ready(out_t1)
    ref_t1 = reference(input_seqs, weight, bias, T=T, O=O, S=S, task_index=1)
    assert out_t1.shape == (B, 1)
    assert jnp.allclose(out_t1, ref_t1, rtol=1e-3, atol=1e-3), (out_t1, ref_t1)

    print("KERNEL_OK")
</pallas_src>

<mosaic_0001>
module attributes {stable_mosaic.version = 11 : i64} {
  func.func @_fused_profile_kernel(%arg0: i32, %arg1: memref<2x64xbf16, #tpu.memory_space<vmem>>, %arg2: memref<64x256xbf16, #tpu.memory_space<vmem>>, %arg3: memref<1x256xf32, #tpu.memory_space<vmem>>, %arg4: memref<256x2xf32, #tpu.memory_space<vmem>>, %arg5: memref<2x1xf32, #tpu.memory_space<vmem>>) attributes {dimension_semantics = [#tpu.dimension_semantics<arbitrary>], iteration_bounds = array<i64: 2>, scalar_prefetch = 0 : i64, scratch_operands = 0 : i64, tpu.core_type = #tpu.core_type<tc>, window_params = [{pipeline_mode = #tpu.pipeline_mode<synchronous>, transform_indices = @transform_0, window_bounds = array<i64: 2, 64>}, {transform_indices = @transform_1, window_bounds = array<i64: 64, 256>}, {transform_indices = @transform_2, window_bounds = array<i64: 1, 256>}, {pipeline_mode = #tpu.pipeline_mode<synchronous>, transform_indices = @transform_3, window_bounds = array<i64: 256, 2>}, {pipeline_mode = #tpu.pipeline_mode<synchronous>, transform_indices = @transform_4, window_bounds = array<i64: 2, 1>}]} {
    %c0 = arith.constant 0 : index
    %c0_0 = arith.constant 0 : index
    %0 = vector.load %arg1[%c0, %c0_0] : memref<2x64xbf16, #tpu.memory_space<vmem>>, vector<2x64xbf16>
    %c0_1 = arith.constant 0 : index
    %c0_2 = arith.constant 0 : index
    %1 = vector.load %arg2[%c0_1, %c0_2] : memref<64x256xbf16, #tpu.memory_space<vmem>>, vector<64x256xbf16>
    %cst = arith.constant dense<0.000000e+00> : vector<2x256xf32>
    %2 = tpu.matmul %0, %1, %cst {dimension_numbers = #tpu.dot_dimension_numbers<[1], [0], [0], [1], [0, 0, 1, 1], [], []>} : vector<2x64xbf16>, vector<64x256xbf16>, vector<2x256xf32> -> vector<2x256xf32>
    %c0_3 = arith.constant 0 : index
    %c0_4 = arith.constant 0 : index
    %3 = vector.load %arg3[%c0_3, %c0_4] : memref<1x256xf32, #tpu.memory_space<vmem>>, vector<1x256xf32>
    %4 = vector.broadcast %3 : vector<1x256xf32> to vector<2x256xf32>
    %5 = arith.addf %2, %4 : vector<2x256xf32>
    %6 = arith.mulf %5, %5 : vector<2x256xf32>
    %cst_5 = arith.constant dense<0.000000e+00> : vector<2xf32>
    %7 = vector.multi_reduction <add>, %6, %cst_5 [1] : vector<2x256xf32> to vector<2xf32>
    %8 = vector.shape_cast %7 : vector<2xf32> to vector<2x1xf32>
    %c0_6 = arith.constant 0 : index
    %c0_7 = arith.constant 0 : index
    %9 = vector.load %arg4[%c0_6, %c0_7] : memref<256x2xf32, #tpu.memory_space<vmem>>, vector<256x2xf32>
    %cst_8 = arith.constant dense<0.000000e+00> : vector<2x2xf32>
    %10 = tpu.matmul %5, %9, %cst_8 {dimension_numbers = #tpu.dot_dimension_numbers<[1], [0], [0], [1], [0, 0, 1, 1], [], []>} : vector<2x256xf32>, vector<256x2xf32>, vector<2x2xf32> -> vector<2x2xf32>
    %11 = arith.mulf %10, %10 : vector<2x2xf32>
    %cst_9 = arith.constant dense<0.000000e+00> : vector<2xf32>
    %12 = vector.multi_reduction <add>, %11, %cst_9 [1] : vector<2x2xf32> to vector<2xf32>
    %13 = vector.shape_cast %12 : vector<2xf32> to vector<2x1xf32>
    %cst_10 = arith.constant 7.812500e-03 : f32
    %14 = vector.broadcast %cst_10 : f32 to vector<2x1xf32>
    %15 = arith.mulf %13, %14 : vector<2x1xf32>
    %16 = arith.subf %8, %15 : vector<2x1xf32>
    %c0_i32 = arith.constant 0 : i32
    %17 = arith.cmpi eq, %arg0, %c0_i32 : i32
    %18 = arith.extui %17 : i1 to i32
    %c0_i32_11 = arith.constant 0 : i32
    %19 = arith.cmpi ne, %18, %c0_i32_11 : i32
    scf.if %19 {
      %cst_16 = arith.constant 0.000000e+00 : f32
      %23 = vector.broadcast %cst_16 : f32 to vector<2x1xf32>
      %c0_17 = arith.constant 0 : index
      %c0_18 = arith.constant 0 : index
      %24 = vector.load %arg5[%c0_17, %c0_18] : memref<2x1xf32, #tpu.memory_space<vmem>>, vector<2x1xf32>
      tpu.vector_store %arg5[%c0_17, %c0_18], %23 {strides = array<i32>} : memref<2x1xf32, #tpu.memory_space<vmem>>, vector<2x1xf32>,
    } else {
    }
    %c0_12 = arith.constant 0 : index
    %c0_13 = arith.constant 0 : index
    %20 = vector.load %arg5[%c0_12, %c0_13] : memref<2x1xf32, #tpu.memory_space<vmem>>, vector<2x1xf32>
    %21 = arith.addf %20, %16 : vector<2x1xf32>
    %c0_14 = arith.constant 0 : index
    %c0_15 = arith.constant 0 : index
    %22 = vector.load %arg5[%c0_14, %c0_15] : memref<2x1xf32, #tpu.memory_space<vmem>>, vector<2x1xf32>
    tpu.vector_store %arg5[%c0_14, %c0_15], %21 {strides = array<i32>} : memref<2x1xf32, #tpu.memory_space<vmem>>, vector<2x1xf32>,
    return
  }
  func.func @transform_0(%arg0: i32) -> (i32, i32) {
    %c0_i32 = arith.constant 0 : i32
    %c0_i32_0 = arith.constant 0 : i32
    %c0_i32_1 = arith.constant 0 : i32
    return %c0_i32, %c0_i32_0 : i32, i32
  }
  func.func @transform_1(%arg0: i32) -> (i32, i32) {
    %c0_i32 = arith.constant 0 : i32
    %c0_i32_0 = arith.constant 0 : i32
    return %c0_i32, %arg0 : i32, i32
  }
  func.func @transform_2(%arg0: i32) -> (i32, i32) {
    %c0_i32 = arith.constant 0 : i32
    %c0_i32_0 = arith.constant 0 : i32
    return %c0_i32, %arg0 : i32, i32
  }
  func.func @transform_3(%arg0: i32) -> (i32, i32) {
    %c0_i32 = arith.constant 0 : i32
    %c0_i32_0 = arith.constant 0 : i32
    %c0_i32_1 = arith.constant 0 : i32
    return %c0_i32, %c0_i32_0 : i32, i32
  }
  func.func @transform_4(%arg0: i32) -> (i32, i32) {
    %c0_i32 = arith.constant 0 : i32
    %c0_i32_0 = arith.constant 0 : i32
    %c0_i32_1 = arith.constant 0 : i32
    return %c0_i32, %c0_i32_0 : i32, i32
  }
}

</mosaic_0001>

<bundles_post_ra>
// kernel: tpu_custom_call.1
= control target key start
LH: loop header
LB: loop body
LE: loop exit
PB: predicated region body
PF: predicated region fallthrough
CT: control target
= control target key end

     0   :  { %s721_s15 = smov 0   ;;  %s723_s16 = smov 0   ;;  %s893_s0 = inlined_call_operand.vmem [shape: bf16[2,64], index: 0, kind: input, shape index: {}]   ;;  %s894_s1 = inlined_call_operand.vmem [shape: bf16[64,512], index: 1, kind: input, shape index: {}]   ;;  %s895_s2 = inlined_call_operand.vmem [shape: f32[1,512], index: 2, kind: input, shape index: {}]   ;;  %s896_s3 = inlined_call_operand.vmem [shape: f32[256,2], index: 3, kind: input, shape index: {}]   ;;  %s897_s4 = inlined_call_operand.vmem [shape: f32[2,1], index: 4, kind: output, shape index: {}]  }
   0x1   :  { %s725_s17 = smov 0  }
   0x2 LB: > { %s543_s18 = sadd.s32 4294967295, %s692_s17   ;;  %s738_s19 = sadd.s32 1, %s692_s17   ;;  %s692_s17 = sphi %s725_s17, %s900_s17   ;;  %s688_s16 = sphi %s723_s16, %s899_s16   ;;  %s684_s15 = sphi %s721_s15, %s898_s15  }
   0x3   : > { %s39_s20 = ssub.s32 %s692_s17, %s738_s19  ;;  %s42_s21 = sadd.s32 1, %s688_s16 }
   0x4   : > { %p40_p0 = scmp.eq.s32.totalorder %s39_s20, 0  ;;  %p49_p1 = scmp.ne.s32.totalorder %s688_s16, %s684_s15 }
   0x5   : > { %p50_p2 = scmp.eq.s32.totalorder %s692_s17, 0  ;;  %p545_p4 = scmp.ge.s32.totalorder %s692_s17, 2 }
   0x6   : > { %s747_s22 = scalar_select %p40_p0, %s688_s16, %s42_s21  }
   0x7   : > { %p51_p3 = por %p50_p2, %p49_p1  ;;  %149 = sbr.rel (%p545_p4) target bundleno = 22 (0x16), region = 24 }
   0xe   : > { %152 = sbr.rel (!%p51_p3) target bundleno = 22 (0x16), region = 28  ;;  %s154_s23 = sand.u32 (%p51_p3), 1, %s688_s16  }
   0xf   : > { %s564_s24 = sshll.u32 (%p51_p3), %s692_s17, 3  ;;  %s546_s25 = sshll.u32 (%p51_p3), %s154_s23, 6 }
  0x10   : > { %s159_s28 = scalar_lea.vmem (%p51_p3), %s894_s1, %s564_s24  ;;  %s156_s29 = scalar_lea.vmem (%p51_p3), [#allocation2], %s546_s25 }
  0x11   : > { %v201_v0 = vld [vmem:[%s159_s28] sm:$0xff] (%p51_p3)  ;;  %v203_v1 = vld [vmem:[%s159_s28 + $0x10] sm:$0xff] (%p51_p3) }
  0x12   : > { %v205_v2 = vld [vmem:[%s159_s28 + $0x20] sm:$0xff] (%p51_p3)  ;;  %202 = vst [vmem:[%s156_s29] sm:$0xff] (%p51_p3), %v201_v0  ;;  %204 = vst [vmem:[%s156_s29 + $0x8] sm:$0xff] (%p51_p3), %v203_v1  ;;  %v207_v3 = vld [vmem:[%s159_s28 + $0x30] sm:$0xff] (%p51_p3) }
  0x13   : > { %206 = vst [vmem:[%s156_s29 + $0x10] sm:$0xff] (%p51_p3), %v205_v2  ;;  %v209_v4 = vld [vmem:[%s159_s28 + $0x40] sm:$0xff] (%p51_p3)  ;;  %v211_v5 = vld [vmem:[%s159_s28 + $0x50] sm:$0xff] (%p51_p3)  ;;  %208 = vst [vmem:[%s156_s29 + $0x18] sm:$0xff] (%p51_p3), %v207_v3 }
  0x14   : > { %210 = vst [vmem:[%s156_s29 + $0x20] sm:$0xff] (%p51_p3), %v209_v4  ;;  %212 = vst [vmem:[%s156_s29 + $0x28] sm:$0xff] (%p51_p3), %v211_v5  ;;  %v213_v6 = vld [vmem:[%s159_s28 + $0x60] sm:$0xff] (%p51_p3)  ;;  %v215_v7 = vld [vmem:[%s159_s28 + $0x70] sm:$0xff] (%p51_p3) }
  0x15   : > { %214 = vst [vmem:[%s156_s29 + $0x30] sm:$0xff] %v213_v6  ;;  %216 = vst [vmem:[%s156_s29 + $0x38] sm:$0xff] %v215_v7 }
  0x16 PF: > { %p549_p5 = scmp.ge.s32.totalorder %s692_s17, 1  ;;  %p229_p6 = scmp.lt.s32.totalorder %s692_s17, 3 }
  0x18   : > { %p230_p7 = pnand %p549_p5, %p229_p6 }
  0x19   : > { %s236_s30 = sand.u32 (!%p230_p7), 1, %s684_s15   ;;  %v397_v8 = vld [vmem:[%s896_s3 + $0x80] sm:$0xff] (!%p230_p7)  ;;  %v694_v9 = vmov (!%p230_p7), 0   ;;  %v398_v10 = vld [vmem:[%s896_s3 + $0x88] sm:$0xff] (!%p230_p7)  ;;  %v399_v15 = vld [vmem:[%s896_s3 + $0x90] sm:$0xff] (!%p230_p7)  ;;  %vm328_vm0 = vcmask (!%p230_p7), 523264   ;;  %v278_v2 = vlaneseq (!%p230_p7) }
  0x1a   : > { %233 = sbr.rel (%p230_p7) target bundleno = 630 (0x276), region = 70  ;;  %s550_s7 = sshll.u32 (!%p230_p7), %s236_s30, 6  ;;  %364 = vmatprep.mubr.bf16.mxu0 (!%p230_p7), %v694_v9  ;;  %v381_v11 = vld [vmem:[%s896_s3] sm:$0xff] (!%p230_p7)  ;;  %v382_v12 = vld [vmem:[%s896_s3 + $0x8] sm:$0xff] (!%p230_p7)  ;;  %v600_v13 = vpack.c.bf16 (!%p230_p7), %v398_v10, %v397_v8  ;;  %v400_v16 = vld [vmem:[%s896_s3 + $0x98] sm:$0xff] (!%p230_p7)  ;;  %vm375_vm1 = vcmask (!%p230_p7), 1041408  }
  0x1b   : > { %v602_v14 = vpack.c.bf16 (!%p230_p7), %v382_v12, %v381_v11  ;;  %s776_s23 = scalar_lea.vmem (!%p230_p7), [#allocation2], %s550_s7  ;;  %v604_v18 = vpack.c.bf16 (!%p230_p7), %v400_v16, %v399_v15  ;;  %v383_v22 = vld [vmem:[%s896_s3 + $0x10] sm:$0xff] (!%p230_p7)  ;;  %v384_v24 = vld [vmem:[%s896_s3 + $0x18] sm:$0xff] (!%p230_p7)  ;;  %v401_v25 = vld [vmem:[%s896_s3 + $0xa0] sm:$0xff] (!%p230_p7)  ;;  %s551_s10 = sshll.u32 (!%p230_p7), %s543_s18, 1  ;;  %v279_v3 = vshrl.u32 (!%p230_p7), %v278_v2, 7 }
  0x1c   : > { %v658_v17 = vld [vmem:[%s776_s23 + $0x4] ss:$8 sps:$4 sm:$0xff] (!%p230_p7)   ;;  %v660_v19 = vld [vmem:[%s776_s23] ss:$8 sps:$4 sm:$0xff] (!%p230_p7)   ;;  %601 = vmatprep.subr.bf16.mxu1 (!%p230_p7), %v600_v13  ;;  %v661_v20 = vld [vmem:[%s776_s23 + $0x14] ss:$8 sps:$4 sm:$0xff] (!%p230_p7)   ;;  %v606_v26 = vpack.c.bf16 (!%p230_p7), %v384_v24, %v383_v22 }
  0x1d   : > { %332 = vmatprep.subr.bf16.mxu0 (!%p230_p7), %v658_v17  ;;  %603 = vmatpush3.bf16.msra.mxu1 (!%p230_p7), %v602_v14  ;;  %v663_v21 = vld [vmem:[%s776_s23 + $0x10] ss:$8 sps:$4 sm:$0xff] (!%p230_p7)   ;;  %v664_v23 = vld [vmem:[%s776_s23 + $0x24] ss:$8 sps:$4 sm:$0xff] (!%p230_p7)   ;;  %v666_v30 = vld [vmem:[%s776_s23 + $0x20] ss:$8 sps:$4 sm:$0xff] (!%p230_p7)  }
  0x1e   : > { %333 = vmatpush1.bf16.msra.mxu0 (!%p230_p7), %v660_v19  ;;  %605 = vmatprep.subr.bf16.mxu1 (!%p230_p7), %v604_v18  ;;  %v402_v27 = vld [vmem:[%s896_s3 + $0xa8] sm:$0xff] (!%p230_p7)  ;;  %v385_v28 = vld [vmem:[%s896_s3 + $0x20] sm:$0xff] (!%p230_p7)  ;;  %v403_v32 = vld [vmem:[%s896_s3 + $0xb0] sm:$0xff] (!%p230_p7)  ;;  %p262_p8 = scmp.lt.s32.totalorder (!%p230_p7), %s551_s10, 3  ;;  %v280_v4 = vsub.s32 (!%p230_p7), 0, %v279_v3  ;;  %v284_v6 = vsub.s32 (!%p230_p7), 1, %v279_v3 }
  0x1f   : > { %334 = vmatprep.subr.bf16.mxu0 (!%p230_p7), %v661_v20  ;;  %v386_v29 = vld [vmem:[%s896_s3 + $0x28] sm:$0xff] (!%p230_p7)  ;;  %v608_v31 = vpack.c.bf16 (!%p230_p7), %v402_v27, %v401_v25  ;;  %v404_v33 = vld [vmem:[%s896_s3 + $0xb8] sm:$0xff] (!%p230_p7)  ;;  %v387_v37 = vld [vmem:[%s896_s3 + $0x30] sm:$0xff] (!%p230_p7)  ;;  %vm484_vm2 = vcmask (!%p230_p7), 9216   ;;  %p561_p9 = scmp.ne.s32.totalorder (!%p230_p7), %s543_s18, 0 }
  0x20   : > { %v667_v34 = vld [vmem:[%s776_s23 + $0x34] ss:$8 sps:$4 sm:$0xff] (!%p230_p7)   ;;  %v610_v35 = vpack.c.bf16 (!%p230_p7), %v386_v29, %v385_v28  ;;  %v612_v36 = vpack.c.bf16 (!%p230_p7), %v404_v33, %v403_v32  ;;  %v405_v39 = vld [vmem:[%s896_s3 + $0xc0] sm:$0xff] (!%p230_p7)  ;;  %v406_v40 = vld [vmem:[%s896_s3 + $0xc8] sm:$0xff] (!%p230_p7) }
  0x21   : > { %607 = vmatpush3.bf16.msra.mxu1 %v606_v26  ;;  %v388_v38 = vld [vmem:[%s896_s3 + $0x38] sm:$0xff]  ;;  %v616_v43 = vpack.c.bf16 %v406_v40, %v405_v39  ;;  %v389_v44 = vld [vmem:[%s896_s3 + $0x40] sm:$0xff]  ;;  %v390_v45 = vld [vmem:[%s896_s3 + $0x48] sm:$0xff]  ;;  %s902_s10 = smov (!%p262_p8, %s551_s10), 3  ;;  %vm494_vm3 = vcmask (!%p561_p9), 1024   ;;  %v695_v29 = vmov (!%p561_p9), 0.0  }
  0x22   : > { %335 = vmatpush1.bf16.msra.mxu0 %v663_v21  ;;  %609 = vmatprep.subr.bf16.mxu1 %v608_v31  ;;  %v669_v41 = vld [vmem:[%s776_s23 + $0x30] ss:$8 sps:$4 sm:$0xff]   ;;  %v614_v42 = vpack.c.bf16 %v388_v38, %v387_v37  ;;  %v267_v48 = vld [vmem:[%s893_s0] sm:$0x1]  ;;  %v618_v49 = vpack.c.bf16 %v390_v45, %v389_v44  ;;  %v410_v54 = vld [vmem:[%s896_s3 + $0xe8] sm:$0xff]  ;;  %s264_s13 = scalar_lea.vmem %s895_s2, %s902_s10 }
  0x23   : > { %336 = vmatprep.subr.bf16.mxu0 %v664_v23  ;;  %v407_v46 = vld [vmem:[%s896_s3 + $0xd0] sm:$0xff]  ;;  %v408_v47 = vld [vmem:[%s896_s3 + $0xd8] sm:$0xff]  ;;  %v409_v53 = vld [vmem:[%s896_s3 + $0xe0] sm:$0xff]  ;;  %495 = vst.msk [vmem:[%s897_s4] sm:$0x3] (!%p561_p9), %vm494_vm3, %v695_v29 }
  0x24   : > { %v620_v50 = vpack.c.bf16 %v408_v47, %v407_v46  ;;  %v391_v51 = vld [vmem:[%s896_s3 + $0x50] sm:$0xff]  ;;  %v392_v52 = vld [vmem:[%s896_s3 + $0x58] sm:$0xff]  ;;  %v624_v56 = vpack.c.bf16 %v410_v54, %v409_v53  ;;  %v393_v57 = vld [vmem:[%s896_s3 + $0x60] sm:$0xff] }
  0x25   : > { %611 = vmatpush3.bf16.msra.mxu1 %v610_v35  ;;  %v622_v55 = vpack.c.bf16 %v392_v52, %v391_v51  ;;  %v394_v58 = vld [vmem:[%s896_s3 + $0x68] sm:$0xff]  ;;  %v411_v60 = vld [vmem:[%s896_s3 + $0xf0] sm:$0xff]  ;;  %v412_v61 = vld [vmem:[%s896_s3 + $0xf8] sm:$0xff] }
  0x26   : > { %337 = vmatpush1.bf16.msra.mxu0 %v666_v30  ;;  %613 = vmatprep.subr.bf16.mxu1 %v612_v36  ;;  %v626_v59 = vpack.c.bf16 %v394_v58, %v393_v57  ;;  %v628_v62 = vpack.c.bf16 %v412_v61, %v411_v60  ;;  %v395_v63 = vld [vmem:[%s896_s3 + $0x70] sm:$0xff]  ;;  %v396_v0 = vld [vmem:[%s896_s3 + $0x78] sm:$0xff]  ;;  %v276_v5 = vld [vmem:[%s264_s13] sm:$0x3] }
  0x27   : > { %338 = vmatprep.subr.bf16.mxu0 %v667_v34  ;;  %v630_v1 = vpack.c.bf16 %v396_v0, %v395_v63  ;;  %v281_v7 = vrot.slane %v276_v5, %v280_v4  ;;  %v285_v8 = vrot.slane %v276_v5, %v284_v6 }
  0x29   : > { %615 = vmatpush3.bf16.msra.mxu1 %v614_v42 }
  0x2a   : > { %339 = vmatpush1.bf16.msra.mxu0 %v669_v41  ;;  %617 = vmatprep.subr.bf16.mxu1 %v616_v43 }
  0x2d   : > { %560 = vmatmul.mubr.msk.bf16.vlgmr.msra.gmra.mrb[0].mxu0 %vm328_vm0, %v267_v48  ;;  %619 = vmatpush3.bf16.msra.mxu1 %v618_v49 }
  0x2e   : > { %621 = vmatprep.subr.bf16.mxu1 %v620_v50 }
  0x31   : > { %623 = vmatpush3.bf16.msra.mxu1 %v622_v55 }
  0x32   : > { %625 = vmatprep.subr.bf16.mxu1 %v624_v56 }
  0x35   : > { %627 = vmatpush3.bf16.msra.mxu1 %v626_v59 }
  0x36   : > { %629 = vmatprep.subr.bf16.mxu1 %v628_v62 }
  0x39   : > { %631 = vmatpush3.bf16.msra.mxu1 %v630_v1 }
 0x100   : > { %v366_v9 = vpop.f32.mrb[0].mxu0 }
 0x101   : > { %v367_v10 = vadd.f32 %v366_v9, %v281_v7  ;;  %v368_v11 = vpop.f32.mrb[1].mxu0 }
 0x102   : > { %v369_v12 = vadd.f32 %v368_v11, %v285_v8  ;;  %v370_v13 = vpop.f32.mrb[2].mxu0 }
 0x103   : > { %v373_v14 = vmul.f32 %v367_v10, %v367_v10  ;;  %v371_v15 = vpop.f32.mrb[3].mxu0 }
 0x104   : > { %v374_v16 = vmul.f32 %v369_v12, %v369_v12  ;;  %477 = vmatprep.mubr.f32.mxu1 %v369_v12 }
 0x105   : > { %478 = vmatmul.mubr.f32.vlgmr.msra.gmra.mrb[0].mxu1 %v367_v10  ;;  %v376_v17 = vsel %vm375_vm1, %v373_v14, 0.0 }
 0x106   : > { %v377_v18 = vsel %vm375_vm1, %v374_v16, 0.0 }
 0x107   : > { %v378_v19 = vadd.f32 %v377_v18, %v376_v17 }
 0x1d8   : > { %v597_v20 = vpop.f32.mrb[0].mxu1 }
 0x1d9   : > { %v598_v21 = vpop.f32.mrb[1].mxu1 }
 0x1da   : > { %v599_v22 = vadd.f32 %v598_v21, %v597_v20 }
 0x1dc   : > { %v483_v23 = vmul.f32 %v599_v22, %v599_v22 }
 0x1de   : > { %v485_v24 = vsel %vm484_vm2, %v483_v23, 0.0 }
 0x1df   : > { %486 = vadd.xlane.f32.xlu0 %v485_v24 }
 0x1e3   : > { %379 = vadd.xlane.f32.xlu0 %v378_v19 }
 0x26b   : > { %493 = sbr.rel (%p561_p9) target bundleno = 626 (0x272), region = 78 }
 0x26c   : > { %v487_v25 = vpop.xlane.xlu0 %486 }
 0x26d   : > { %v488_v26 = vmul.f32 0.0078125, %v487_v25 }
 0x270   : > { %v380_v27 = vpop.xlane.xlu0 %379 }
 0x271   : > { %v489_v28 = vsub.f32 %v380_v27, %v488_v26 }
 0x272 PF: > { %v496_v30 = vld [vmem:[%s897_s4] sm:$0x3]  ;;  %vm498_vm4 = vcmask 1024  }
 0x273   : > { %v497_v31 = vadd.f32 %v496_v30, %v489_v28 }
 0x275   : > { %499 = vst.msk [vmem:[%s897_s4] sm:$0x3] %vm498_vm4, %v497_v31 }
 0x276 PF: > { %p11_p10 = scmp.ge.s32.totalorder %s738_s19, 4   ;;  %s898_s15 = smov %s688_s16 }
 0x277   : > { %s899_s16 = smov %s747_s22  ;;  %s900_s17 = smov %s738_s19 }
 0x278   :  { %13 = sbr.rel (!%p11_p10) target bundleno = 2 (0x2), region = 112 }

</bundles_post_ra>
